<compile_context>
chip_gen: v5e
topology: v5e:2x2
jax: 0.10.0
libtpu: 0.0.40
codegen_flags: <defaults>
</compile_context>

<pallas_src>
import functools

import jax
import jax.numpy as jnp
import numpy as np
from jax.experimental import pallas as pl
from jax.experimental.pallas import tpu as pltpu

BN_EPS = 1e-5
TILE_COUT = 128
MAX_TILE_M = 2048
_SQRT_2_OVER_PI = 0.7978845608028654


def _round_up(x, m):
    return (x + m - 1) // m * m


# --------------------------------------------------------------------------- kernels

def _stats_kernel(p_ref, w_ref, stats_ref):
    """Pass 1: conv tile on the MXU; emit partial per-channel sum / sum-of-squares."""
    y = jnp.dot(p_ref[...], w_ref[...], preferred_element_type=jnp.float32)
    stats_ref[...] = jnp.concatenate(
        [jnp.sum(y, axis=0, keepdims=True),
         jnp.sum(y * y, axis=0, keepdims=True)],
        axis=0)  # (2, TILE_COUT)


def _conv_bn_kernel(p_ref, w_ref, ss_ref, o_ref, *, apply_gelu):
    """Pass 2: recompute the conv tile and apply folded BN scale/shift [+ GELU]."""
    y = jnp.dot(p_ref[...], w_ref[...], preferred_element_type=jnp.float32)
    z = y * ss_ref[0:1, :] + ss_ref[1:2, :]
    if apply_gelu:
        # TODO(synk): PyTorch nn.GELU() defaults to the exact erf form; the tanh
        # approximation is used here since erf lowering in Mosaic is not guaranteed.
        z = 0.5 * z * (1.0 + jnp.tanh(_SQRT_2_OVER_PI * (z + 0.044715 * (z * z * z))))
    o_ref[...] = z.astype(o_ref.dtype)


# --------------------------------------------------------------------------- glue / wrapper

def _patch_in_spec(tile_m, k, n_m_tiles):
    """BlockSpec for the patch operand; 3-deep pipelining when there are enough M tiles."""
    index_map = lambda ci, mi: (mi, 0)
    if n_m_tiles >= 3:
        try:
            return pl.BlockSpec((tile_m, k), index_map, pipeline_mode=pl.Buffered(3))
        except (AttributeError, TypeError):
            pass
    return pl.BlockSpec((tile_m, k), index_map)


def _vmem_limit_bytes(tile_bytes):
    """~2x the double-buffered footprint + slack, clamped below v7x's 64 MiB VMEM."""
    return int(min(max(4 * tile_bytes + (8 << 20), 16 << 20), 56 << 20))


def _im2col_patches(x_nhwc_bf16, ho, wo, m_pad):
    """(N, H, W, Cin) NHWC bf16 -> (M_pad, 9*Cin) bf16 patch rows, k=3 s=2 p=1 (unpadded K)."""
    n, h, w, cin = x_nhwc_bf16.shape
    xp = jnp.pad(x_nhwc_bf16, ((0, 0), (1, 1), (1, 1), (0, 0)))
    cols = [xp[:, dh:dh + 2 * ho:2, dw:dw + 2 * wo:2, :]
            for dh in range(3) for dw in range(3)]       # feature order (kh, kw, cin)
    p = jnp.concatenate(cols, axis=-1).reshape(n * ho * wo, 9 * cin)
    return jnp.pad(p, ((0, m_pad - n * ho * wo), (0, 0)))


def _conv_bn_stage(x_nhwc, conv_w, gamma, beta, *, apply_gelu, out_dtype):
    """One Conv2d(k=3, s=2, p=1, bias dropped) + BatchNorm2d (training stats) [+ GELU].

    Takes and returns NHWC; the conv bias is exactly cancelled by the training-mode
    BN mean subtraction, so it is folded away.
    """
    n, h, w, cin = x_nhwc.shape
    cout = conv_w.shape[0]
    ho = (h + 2 - 3) // 2 + 1
    wo = (w + 2 - 3) // 2 + 1

    m = n * ho * wo
    k = cin * 9
    cout_pad = _round_up(cout, TILE_COUT)
    n_cout_tiles = cout_pad // TILE_COUT

    n_m_tiles = pl.cdiv(m, MAX_TILE_M)
    tile_m = _round_up(pl.cdiv(m, n_m_tiles), 8)
    m_pad = tile_m * n_m_tiles

    patches = _im2col_patches(x_nhwc.astype(jnp.bfloat16), ho, wo, m_pad)

    # (Cout, Cin, 3, 3) -> (K, Cout_pad), K ordered (kh, kw, cin); bf16 for the MXU.
    w_mat = conv_w.transpose(2, 3, 1, 0).reshape(k, cout).astype(jnp.bfloat16)
    w_mat = jnp.pad(w_mat, ((0, 0), (0, cout_pad - cout)))

    grid = (n_cout_tiles, n_m_tiles)
    patch_spec = _patch_in_spec(tile_m, k, n_m_tiles)
    w_spec = pl.BlockSpec((k, TILE_COUT), lambda ci, mi: (0, ci))

    out_itemsize = jnp.dtype(out_dtype).itemsize
    tile_bytes = (tile_m * k * 2 + k * TILE_COUT * 2
                  + tile_m * TILE_COUT * out_itemsize + 2 * TILE_COUT * 4)
    cparams = pltpu.CompilerParams(
        dimension_semantics=("parallel", "parallel"),
        vmem_limit_bytes=_vmem_limit_bytes(tile_bytes))

    # ---- pass 1: partial per-channel sum / sum-of-squares (stats only) -----------------
    partial = pl.pallas_call(
        _stats_kernel,
        out_shape=jax.ShapeDtypeStruct((n_m_tiles, 2, cout_pad), jnp.float32),
        grid=grid,
        in_specs=[patch_spec, w_spec],
        out_specs=pl.BlockSpec((None, 2, TILE_COUT), lambda ci, mi: (mi, 0, ci)),
        compiler_params=cparams,
        cost_estimate=pl.CostEstimate(
            flops=2 * m_pad * k * cout_pad,
            transcendentals=0,
            bytes_accessed=(n_cout_tiles * m_pad * k * 2      # patches re-read per cout tile
                            + k * cout_pad * 2                 # weights fetched once per cout tile
                            + n_m_tiles * 2 * cout_pad * 4)),  # partial stats
    )(patches, w_mat)

    # ---- tiny XLA glue: reduce partial stats, fold BN into (scale, shift) --------------
    stats = jnp.sum(partial, axis=0)                     # (2, cout_pad) f32
    mean = stats[0] / m
    var = jnp.maximum(stats[1] / m - mean * mean, 0.0)
    g_pad = jnp.pad(gamma.astype(jnp.float32), (0, cout_pad - cout))
    b_pad = jnp.pad(beta.astype(jnp.float32), (0, cout_pad - cout))
    scale = jax.lax.rsqrt(var + BN_EPS) * g_pad
    shift = b_pad - mean * scale
    scale_shift = jnp.stack([scale, shift], axis=0)      # (2, cout_pad)

    # ---- pass 2: recompute conv tile + apply folded BN (+ GELU), lane-dense output -----
    out_flat = pl.pallas_call(
        functools.partial(_conv_bn_kernel, apply_gelu=apply_gelu),
        out_shape=jax.ShapeDtypeStruct((m_pad, cout_pad), out_dtype),
        grid=grid,
        in_specs=[patch_spec, w_spec,
                  pl.BlockSpec((2, TILE_COUT), lambda ci, mi: (0, ci))],
        out_specs=pl.BlockSpec((tile_m, TILE_COUT), lambda ci, mi: (mi, ci)),
        compiler_params=cparams,
        cost_estimate=pl.CostEstimate(
            flops=2 * m_pad * k * cout_pad,
            transcendentals=(m_pad * cout_pad if apply_gelu else 0),
            bytes_accessed=(n_cout_tiles * m_pad * k * 2 + k * cout_pad * 2
                            + 2 * cout_pad * 4 + m_pad * cout_pad * out_itemsize)),
    )(patches, w_mat, scale_shift)

    # Strip padding; stay NHWC (flat M -> (N, Ho, Wo, Cout)); no transposes between stages.
    return out_flat[:m, :cout].reshape(n, ho, wo, cout)


@jax.jit
def stemconv_forward(x, w1, b1, g1, beta1, w2, b2, g2, beta2):
    """StemConv forward (training-mode BN batch stats), NCHW in / NCHW out.

    Conv biases b1/b2 are accepted for interface parity with nn.Conv2d but dropped:
    a per-channel bias is exactly cancelled by the training-mode BN mean subtraction.
    """
    del b1, b2
    x_nhwc = x.astype(jnp.float32).transpose(0, 2, 3, 1)
    h1 = _conv_bn_stage(x_nhwc, w1, g1, beta1, apply_gelu=True, out_dtype=jnp.bfloat16)
    h2 = _conv_bn_stage(h1, w2, g2, beta2, apply_gelu=False, out_dtype=jnp.float32)
    return h2.transpose(0, 3, 1, 2)


# --------------------------------------------------------------------------- reference / test

def _reference(x, w1, b1, g1, beta1, w2, b2, g2, beta2):
    def conv_bn(xx, w, b, g, be):
        y = jax.lax.conv_general_dilated(
            xx.astype(jnp.bfloat16), w.astype(jnp.bfloat16),
            window_strides=(2, 2), padding=((1, 1), (1, 1)),
            dimension_numbers=("NCHW", "OIHW", "NCHW"),
            preferred_element_type=jnp.float32)
        y = y + b.reshape(1, -1, 1, 1)
        mean = jnp.mean(y, axis=(0, 2, 3), keepdims=True)
        var = jnp.mean((y - mean) ** 2, axis=(0, 2, 3), keepdims=True)
        y = (y - mean) * jax.lax.rsqrt(var + BN_EPS)
        return y * g.reshape(1, -1, 1, 1) + be.reshape(1, -1, 1, 1)

    h = conv_bn(x.astype(jnp.float32), w1, b1, g1, beta1)
    h = jax.nn.gelu(h, approximate=True)   # tanh approximation, matching the kernel
    return conv_bn(h, w2, b2, g2, beta2)


if __name__ == "__main__":
    N, C_IN, C_OUT, H, W = 2, 4, 16, 16, 16
    C_MID = C_OUT // 2

    key = jax.random.PRNGKey(0)
    kx, kw1, kb1, kw2, kb2 = jax.random.split(key, 5)
    x = jax.random.normal(kx, (N, C_IN, H, W), dtype=jnp.float32)

    def conv_params(kw, kb, cout, cin):
        bound = 1.0 / np.sqrt(cin * 9)
        w = jax.random.uniform(kw, (cout, cin, 3, 3), jnp.float32, -bound, bound)
        b = jax.random.uniform(kb, (cout,), jnp.float32, -bound, bound)
        return w, b

    w1, b1 = conv_params(kw1, kb1, C_MID, C_IN)
    w2, b2 = conv_params(kw2, kb2, C_OUT, C_MID)
    g1 = 1.0 + 0.1 * jnp.arange(C_MID, dtype=jnp.float32)
    beta1 = 0.05 * jnp.arange(C_MID, dtype=jnp.float32)
    g2 = 1.0 + 0.05 * jnp.arange(C_OUT, dtype=jnp.float32)
    beta2 = 0.02 * jnp.arange(C_OUT, dtype=jnp.float32)

    out = stemconv_forward(x, w1, b1, g1, beta1, w2, b2, g2, beta2)
    out = jax.block_until_ready(out)

    ref = _reference(x, w1, b1, g1, beta1, w2, b2, g2, beta2)
    assert out.shape == (N, C_OUT, H // 4, W // 4), out.shape
    # bf16 MXU inputs / bf16 inter-stage activation with f32 accumulation -> ~1-2% tolerance.
    np.testing.assert_allclose(np.asarray(out), np.asarray(ref), rtol=2e-2, atol=2e-2)

    print("KERNEL_OK")
</pallas_src>

<mosaic_0001>
module attributes {stable_mosaic.version = 11 : i64} {
  func.func @_conv_bn_kernel(%arg0: i32, %arg1: i32, %arg2: memref<128x36xbf16, #tpu.memory_space<vmem>>, %arg3: memref<36x128xbf16, #tpu.memory_space<vmem>>, %arg4: memref<2x128xf32, #tpu.memory_space<vmem>>, %arg5: memref<128x128xbf16, #tpu.memory_space<vmem>>) attributes {dimension_semantics = [#tpu.dimension_semantics<parallel>, #tpu.dimension_semantics<parallel>], iteration_bounds = array<i64: 1, 1>, scalar_prefetch = 0 : i64, scratch_operands = 0 : i64, tpu.core_type = #tpu.core_type<tc>, window_params = [{transform_indices = @transform_0, window_bounds = array<i64: 128, 36>}, {transform_indices = @transform_1, window_bounds = array<i64: 36, 128>}, {transform_indices = @transform_2, window_bounds = array<i64: 2, 128>}, {transform_indices = @transform_3, window_bounds = array<i64: 128, 128>}]} {
    %c0 = arith.constant 0 : index
    %c0_0 = arith.constant 0 : index
    %0 = vector.load %arg2[%c0, %c0_0] : memref<128x36xbf16, #tpu.memory_space<vmem>>, vector<128x36xbf16>
    %c0_1 = arith.constant 0 : index
    %c0_2 = arith.constant 0 : index
    %1 = vector.load %arg3[%c0_1, %c0_2] : memref<36x128xbf16, #tpu.memory_space<vmem>>, vector<36x128xbf16>
    %cst = arith.constant dense<0.000000e+00> : vector<128x128xf32>
    %2 = tpu.matmul %0, %1, %cst {dimension_numbers = #tpu.dot_dimension_numbers<[1], [0], [0], [1], [0, 0, 1, 1], [], []>} : vector<128x36xbf16>, vector<36x128xbf16>, vector<128x128xf32> -> vector<128x128xf32>
    %c0_3 = arith.constant 0 : index
    %c0_4 = arith.constant 0 : index
    %3 = vector.load %arg4[%c0_3, %c0_4] : memref<2x128xf32, #tpu.memory_space<vmem>>, vector<1x128xf32>
    %4 = vector.broadcast %3 : vector<1x128xf32> to vector<128x128xf32>
    %5 = arith.mulf %2, %4 : vector<128x128xf32>
    %c1 = arith.constant 1 : index
    %c0_5 = arith.constant 0 : index
    %6 = vector.load %arg4[%c1, %c0_5] : memref<2x128xf32, #tpu.memory_space<vmem>>, vector<1x128xf32>
    %7 = vector.broadcast %6 : vector<1x128xf32> to vector<128x128xf32>
    %8 = arith.addf %5, %7 : vector<128x128xf32>
    %cst_6 = arith.constant 5.000000e-01 : f32
    %9 = vector.broadcast %cst_6 : f32 to vector<128x128xf32>
    %10 = arith.mulf %9, %8 : vector<128x128xf32>
    %11 = arith.mulf %8, %8 : vector<128x128xf32>
    %12 = arith.mulf %11, %8 : vector<128x128xf32>
    %cst_7 = arith.constant 4.471500e-02 : f32
    %13 = vector.broadcast %cst_7 : f32 to vector<128x128xf32>
    %14 = arith.mulf %13, %12 : vector<128x128xf32>
    %15 = arith.addf %8, %14 : vector<128x128xf32>
    %cst_8 = arith.constant 0.797884583 : f32
    %16 = vector.broadcast %cst_8 : f32 to vector<128x128xf32>
    %17 = arith.mulf %16, %15 : vector<128x128xf32>
    %18 = math.tanh %17 : vector<128x128xf32>
    %cst_9 = arith.constant 1.000000e+00 : f32
    %19 = vector.broadcast %cst_9 : f32 to vector<128x128xf32>
    %20 = arith.addf %19, %18 : vector<128x128xf32>
    %21 = arith.mulf %10, %20 : vector<128x128xf32>
    %22 = arith.truncf %21 : vector<128x128xf32> to vector<128x128xbf16>
    %c0_10 = arith.constant 0 : index
    %c0_11 = arith.constant 0 : index
    %23 = vector.load %arg5[%c0_10, %c0_11] : memref<128x128xbf16, #tpu.memory_space<vmem>>, vector<128x128xbf16>
    tpu.vector_store %arg5[%c0_10, %c0_11], %22 {strides = array<i32>} : memref<128x128xbf16, #tpu.memory_space<vmem>>, vector<128x128xbf16>,
    return
  }
  func.func @transform_0(%arg0: i32, %arg1: i32) -> (i32, i32) {
    %c0_i32 = arith.constant 0 : i32
    %c0_i32_0 = arith.constant 0 : i32
    return %arg1, %c0_i32 : i32, i32
  }
  func.func @transform_1(%arg0: i32, %arg1: i32) -> (i32, i32) {
    %c0_i32 = arith.constant 0 : i32
    %c0_i32_0 = arith.constant 0 : i32
    return %c0_i32, %arg0 : i32, i32
  }
  func.func @transform_2(%arg0: i32, %arg1: i32) -> (i32, i32) {
    %c0_i32 = arith.constant 0 : i32
    %c0_i32_0 = arith.constant 0 : i32
    return %c0_i32, %arg0 : i32, i32
  }
  func.func @transform_3(%arg0: i32, %arg1: i32) -> (i32, i32) {
    %c0_i32 = arith.constant 0 : i32
    return %arg1, %arg0 : i32, i32
  }
}

module attributes {stable_mosaic.version = 11 : i64} {
  func.func @_stats_kernel(%arg0: i32, %arg1: i32, %arg2: memref<128x36xbf16, #tpu.memory_space<vmem>>, %arg3: memref<36x128xbf16, #tpu.memory_space<vmem>>, %arg4: memref<1x2x128xf32, #tpu.memory_space<vmem>>) attributes {dimension_semantics = [#tpu.dimension_semantics<parallel>, #tpu.dimension_semantics<parallel>], iteration_bounds = array<i64: 1, 1>, scalar_prefetch = 0 : i64, scratch_operands = 0 : i64, tpu.core_type = #tpu.core_type<tc>, window_params = [{transform_indices = @transform_0, window_bounds = array<i64: 128, 36>}, {transform_indices = @transform_1, window_bounds = array<i64: 36, 128>}, {transform_indices = @transform_2, window_bounds = array<i64: 1, 2, 128>}]} {
    %c0 = arith.constant 0 : index
    %c0_0 = arith.constant 0 : index
    %0 = vector.load %arg2[%c0, %c0_0] : memref<128x36xbf16, #tpu.memory_space<vmem>>, vector<128x36xbf16>
    %c0_1 = arith.constant 0 : index
    %c0_2 = arith.constant 0 : index
    %1 = vector.load %arg3[%c0_1, %c0_2] : memref<36x128xbf16, #tpu.memory_space<vmem>>, vector<36x128xbf16>
    %cst = arith.constant dense<0.000000e+00> : vector<128x128xf32>
    %2 = tpu.matmul %0, %1, %cst {dimension_numbers = #tpu.dot_dimension_numbers<[1], [0], [0], [1], [0, 0, 1, 1], [], []>} : vector<128x36xbf16>, vector<36x128xbf16>, vector<128x128xf32> -> vector<128x128xf32>
    %cst_3 = arith.constant dense<0.000000e+00> : vector<128xf32>
    %3 = vector.multi_reduction <add>, %2, %cst_3 [0] : vector<128x128xf32> to vector<128xf32>
    %4 = vector.shape_cast %3 : vector<128xf32> to vector<1x128xf32>
    %5 = arith.mulf %2, %2 : vector<128x128xf32>
    %cst_4 = arith.constant dense<0.000000e+00> : vector<128xf32>
    %6 = vector.multi_reduction <add>, %5, %cst_4 [0] : vector<128x128xf32> to vector<128xf32>
    %7 = vector.shape_cast %6 : vector<128xf32> to vector<1x128xf32>
    %8 = tpu.concatenate %4, %7 in 0 : vector<1x128xf32>, vector<1x128xf32> -> vector<2x128xf32>
    %c0_5 = arith.constant 0 : index
    %c0_6 = arith.constant 0 : index
    %c0_7 = arith.constant 0 : index
    %9 = vector.load %arg4[%c0_5, %c0_6, %c0_7] : memref<1x2x128xf32, #tpu.memory_space<vmem>>, vector<1x2x128xf32>
    %10 = vector.shape_cast %9 : vector<1x2x128xf32> to vector<2x128xf32>
    %11 = vector.shape_cast %8 : vector<2x128xf32> to vector<1x2x128xf32>
    tpu.vector_store %arg4[%c0_5, %c0_6, %c0_7], %11 {strides = array<i32>} : memref<1x2x128xf32, #tpu.memory_space<vmem>>, vector<1x2x128xf32>,
    return
  }
  func.func @transform_0(%arg0: i32, %arg1: i32) -> (i32, i32) {
    %c0_i32 = arith.constant 0 : i32
    %c0_i32_0 = arith.constant 0 : i32
    return %arg1, %c0_i32 : i32, i32
  }
  func.func @transform_1(%arg0: i32, %arg1: i32) -> (i32, i32) {
    %c0_i32 = arith.constant 0 : i32
    %c0_i32_0 = arith.constant 0 : i32
    return %c0_i32, %arg0 : i32, i32
  }
  func.func @transform_2(%arg0: i32, %arg1: i32) -> (i32, i32, i32) {
    %c0_i32 = arith.constant 0 : i32
    %c0_i32_0 = arith.constant 0 : i32
    return %arg1, %c0_i32, %arg0 : i32, i32, i32
  }
}

module attributes {stable_mosaic.version = 11 : i64} {
  func.func @_stats_kernel(%arg0: i32, %arg1: i32, %arg2: memref<32x72xbf16, #tpu.memory_space<vmem>>, %arg3: memref<72x128xbf16, #tpu.memory_space<vmem>>, %arg4: memref<1x2x128xf32, #tpu.memory_space<vmem>>) attributes {dimension_semantics = [#tpu.dimension_semantics<parallel>, #tpu.dimension_semantics<parallel>], iteration_bounds = array<i64: 1, 1>, scalar_prefetch = 0 : i64, scratch_operands = 0 : i64, tpu.core_type = #tpu.core_type<tc>, window_params = [{transform_indices = @transform_0, window_bounds = array<i64: 32, 72>}, {transform_indices = @transform_1, window_bounds = array<i64: 72, 128>}, {transform_indices = @transform_2, window_bounds = array<i64: 1, 2, 128>}]} {
    %c0 = arith.constant 0 : index
    %c0_0 = arith.constant 0 : index
    %0 = vector.load %arg2[%c0, %c0_0] : memref<32x72xbf16, #tpu.memory_space<vmem>>, vector<32x72xbf16>
    %c0_1 = arith.constant 0 : index
    %c0_2 = arith.constant 0 : index
    %1 = vector.load %arg3[%c0_1, %c0_2] : memref<72x128xbf16, #tpu.memory_space<vmem>>, vector<72x128xbf16>
    %cst = arith.constant dense<0.000000e+00> : vector<32x128xf32>
    %2 = tpu.matmul %0, %1, %cst {dimension_numbers = #tpu.dot_dimension_numbers<[1], [0], [0], [1], [0, 0, 1, 1], [], []>} : vector<32x72xbf16>, vector<72x128xbf16>, vector<32x128xf32> -> vector<32x128xf32>
    %cst_3 = arith.constant dense<0.000000e+00> : vector<128xf32>
    %3 = vector.multi_reduction <add>, %2, %cst_3 [0] : vector<32x128xf32> to vector<128xf32>
    %4 = vector.shape_cast %3 : vector<128xf32> to vector<1x128xf32>
    %5 = arith.mulf %2, %2 : vector<32x128xf32>
    %cst_4 = arith.constant dense<0.000000e+00> : vector<128xf32>
    %6 = vector.multi_reduction <add>, %5, %cst_4 [0] : vector<32x128xf32> to vector<128xf32>
    %7 = vector.shape_cast %6 : vector<128xf32> to vector<1x128xf32>
    %8 = tpu.concatenate %4, %7 in 0 : vector<1x128xf32>, vector<1x128xf32> -> vector<2x128xf32>
    %c0_5 = arith.constant 0 : index
    %c0_6 = arith.constant 0 : index
    %c0_7 = arith.constant 0 : index
    %9 = vector.load %arg4[%c0_5, %c0_6, %c0_7] : memref<1x2x128xf32, #tpu.memory_space<vmem>>, vector<1x2x128xf32>
    %10 = vector.shape_cast %9 : vector<1x2x128xf32> to vector<2x128xf32>
    %11 = vector.shape_cast %8 : vector<2x128xf32> to vector<1x2x128xf32>
    tpu.vector_store %arg4[%c0_5, %c0_6, %c0_7], %11 {strides = array<i32>} : memref<1x2x128xf32, #tpu.memory_space<vmem>>, vector<1x2x128xf32>,
    return
  }
  func.func @transform_0(%arg0: i32, %arg1: i32) -> (i32, i32) {
    %c0_i32 = arith.constant 0 : i32
    %c0_i32_0 = arith.constant 0 : i32
    return %arg1, %c0_i32 : i32, i32
  }
  func.func @transform_1(%arg0: i32, %arg1: i32) -> (i32, i32) {
    %c0_i32 = arith.constant 0 : i32
    %c0_i32_0 = arith.constant 0 : i32
    return %c0_i32, %arg0 : i32, i32
  }
  func.func @transform_2(%arg0: i32, %arg1: i32) -> (i32, i32, i32) {
    %c0_i32 = arith.constant 0 : i32
    %c0_i32_0 = arith.constant 0 : i32
    return %arg1, %c0_i32, %arg0 : i32, i32, i32
  }
}

module attributes {stable_mosaic.version = 11 : i64} {
  func.func @_conv_bn_kernel(%arg0: i32, %arg1: i32, %arg2: memref<32x72xbf16, #tpu.memory_space<vmem>>, %arg3: memref<72x128xbf16, #tpu.memory_space<vmem>>, %arg4: memref<2x128xf32, #tpu.memory_space<vmem>>, %arg5: memref<32x128xf32, #tpu.memory_space<vmem>>) attributes {dimension_semantics = [#tpu.dimension_semantics<parallel>, #tpu.dimension_semantics<parallel>], iteration_bounds = array<i64: 1, 1>, scalar_prefetch = 0 : i64, scratch_operands = 0 : i64, tpu.core_type = #tpu.core_type<tc>, window_params = [{transform_indices = @transform_0, window_bounds = array<i64: 32, 72>}, {transform_indices = @transform_1, window_bounds = array<i64: 72, 128>}, {transform_indices = @transform_2, window_bounds = array<i64: 2, 128>}, {transform_indices = @transform_3, window_bounds = array<i64: 32, 128>}]} {
    %c0 = arith.constant 0 : index
    %c0_0 = arith.constant 0 : index
    %0 = vector.load %arg2[%c0, %c0_0] : memref<32x72xbf16, #tpu.memory_space<vmem>>, vector<32x72xbf16>
    %c0_1 = arith.constant 0 : index
    %c0_2 = arith.constant 0 : index
    %1 = vector.load %arg3[%c0_1, %c0_2] : memref<72x128xbf16, #tpu.memory_space<vmem>>, vector<72x128xbf16>
    %cst = arith.constant dense<0.000000e+00> : vector<32x128xf32>
    %2 = tpu.matmul %0, %1, %cst {dimension_numbers = #tpu.dot_dimension_numbers<[1], [0], [0], [1], [0, 0, 1, 1], [], []>} : vector<32x72xbf16>, vector<72x128xbf16>, vector<32x128xf32> -> vector<32x128xf32>
    %c0_3 = arith.constant 0 : index
    %c0_4 = arith.constant 0 : index
    %3 = vector.load %arg4[%c0_3, %c0_4] : memref<2x128xf32, #tpu.memory_space<vmem>>, vector<1x128xf32>
    %4 = vector.broadcast %3 : vector<1x128xf32> to vector<32x128xf32>
    %5 = arith.mulf %2, %4 : vector<32x128xf32>
    %c1 = arith.constant 1 : index
    %c0_5 = arith.constant 0 : index
    %6 = vector.load %arg4[%c1, %c0_5] : memref<2x128xf32, #tpu.memory_space<vmem>>, vector<1x128xf32>
    %7 = vector.broadcast %6 : vector<1x128xf32> to vector<32x128xf32>
    %8 = arith.addf %5, %7 : vector<32x128xf32>
    %c0_6 = arith.constant 0 : index
    %c0_7 = arith.constant 0 : index
    %9 = vector.load %arg5[%c0_6, %c0_7] : memref<32x128xf32, #tpu.memory_space<vmem>>, vector<32x128xf32>
    tpu.vector_store %arg5[%c0_6, %c0_7], %8 {strides = array<i32>} : memref<32x128xf32, #tpu.memory_space<vmem>>, vector<32x128xf32>,
    return
  }
  func.func @transform_0(%arg0: i32, %arg1: i32) -> (i32, i32) {
    %c0_i32 = arith.constant 0 : i32
    %c0_i32_0 = arith.constant 0 : i32
    return %arg1, %c0_i32 : i32, i32
  }
  func.func @transform_1(%arg0: i32, %arg1: i32) -> (i32, i32) {
    %c0_i32 = arith.constant 0 : i32
    %c0_i32_0 = arith.constant 0 : i32
    return %c0_i32, %arg0 : i32, i32
  }
  func.func @transform_2(%arg0: i32, %arg1: i32) -> (i32, i32) {
    %c0_i32 = arith.constant 0 : i32
    %c0_i32_0 = arith.constant 0 : i32
    return %c0_i32, %arg0 : i32, i32
  }
  func.func @transform_3(%arg0: i32, %arg1: i32) -> (i32, i32) {
    %c0_i32 = arith.constant 0 : i32
    return %arg1, %arg0 : i32, i32
  }
}

</mosaic_0001>

<bundles_post_ra>
// kernel: stemconv_forward.5
= control target key start
LH: loop header
LB: loop body
LE: loop exit
PB: predicated region body
PF: predicated region fallthrough
CT: control target
= control target key end

     0   :  { %vm116_vm0 = vcmask 1041408   ;;  %vm91_vm1 = vcmask 293888   ;;  %s744_s1 = inlined_call_operand.vmem [shape: bf16[36,128], index: 1, kind: input, shape index: {}]   ;;  %s745_s2 = inlined_call_operand.vmem [shape: f32[2,128], index: 2, kind: input, shape index: {}]   ;;  %s746_s0 = inlined_call_operand.vmem [shape: bf16[128,36], index: 0, kind: input, shape index: {}]   ;;  %s747_s3 = inlined_call_operand.vmem [shape: bf16[128,128], index: 3, kind: output, shape index: {}]  }
   0x1   :  { %v35_v0 = vld [vmem:[%s744_s1 + $0x10] sm:$0x3]  ;;  %v442_v4 = vld [vmem:[%s744_s1 + $0x8] sm:$0xff]  ;;  %v441_v5 = vld [vmem:[%s744_s1] sm:$0xff] }
   0x2   :  { %v85_v1 = vunpack.c.l.b16 %v35_v0  ;;  %v433_v6 = vld [vmem:[%s746_s0] sm:$0xff]  ;;  %v435_v7 = vld [vmem:[%s746_s0 + $0x10] sm:$0xff]  ;;  %v434_v10 = vld [vmem:[%s746_s0 + $0x8] sm:$0xff] }
   0x3   :  { %v437_v8 = vld [vmem:[%s746_s0 + $0x20] sm:$0xff]  ;;  %v439_v9 = vld [vmem:[%s746_s0 + $0x30] sm:$0xff]  ;;  %v436_v11 = vld [vmem:[%s746_s0 + $0x18] sm:$0xff] }
   0x4   :  { %v88_v2 = vpack.c.b16 %v85_v1, %v85_v1  ;;  %v438_v12 = vld [vmem:[%s746_s0 + $0x28] sm:$0xff]  ;;  %v440_v13 = vld [vmem:[%s746_s0 + $0x38] sm:$0xff]  ;;  %v597_v14 = vld [vmem:[%s745_s2] ss:$0 sm:$0xff] }
   0x5   :  { %v602_v15 = vld [vmem:[%s745_s2 + $0x1] ss:$0 sm:$0xff] }
   0x6   :  { %v118_v3 = vsel %vm116_vm0, %v88_v2, 0 }
   0x7   :  { %125 = vmatpush.bf16.msra.mxu0 %v118_v3  ;;  %490 = vmatpush.bf16.msra.mxu1 %v118_v3 }
   0x8   :  { %491 = vmatpush.bf16.msra.mxu2 %v118_v3  ;;  %492 = vmatpush.bf16.msra.mxu3 %v118_v3 }
   0xb   :  { %126 = vmatpush.bf16.msra.mxu0 %v442_v4  ;;  %493 = vmatpush.bf16.msra.mxu1 %v442_v4 }
   0xc   :  { %494 = vmatpush.bf16.msra.mxu2 %v442_v4  ;;  %495 = vmatpush.bf16.msra.mxu3 %v442_v4 }
   0xf   :  { %127 = vmatpush.bf16.msra.mxu0 %v441_v5  ;;  %496 = vmatpush.bf16.msra.mxu1 %v441_v5 }
  0x10   :  { %497 = vmatpush.bf16.msra.mxu2 %v441_v5  ;;  %498 = vmatpush.bf16.msra.mxu3 %v441_v5 }
  0x12   :  { %425 = vmatmul.msk.bf16.vlgmr.msra.gmra.mxu0 %vm91_vm1, %v433_v6  ;;  %427 = vmatmul.msk.bf16.vlgmr.msra.gmra.mxu1 %vm91_vm1, %v435_v7 }
  0x13   :  { %429 = vmatmul.msk.bf16.vlgmr.msra.gmra.mxu2 %vm91_vm1, %v437_v8  ;;  %431 = vmatmul.msk.bf16.vlgmr.msra.gmra.mxu3 %vm91_vm1, %v439_v9 }
  0x22   :  { %426 = vmatmul.msk.bf16.gmra.mxu0 %vm91_vm1, %v434_v10  ;;  %428 = vmatmul.msk.bf16.gmra.mxu1 %vm91_vm1, %v436_v11 }
  0x23   :  { %430 = vmatmul.msk.bf16.gmra.mxu2 %vm91_vm1, %v438_v12  ;;  %432 = vmatmul.msk.bf16.gmra.mxu3 %vm91_vm1, %v440_v13 }
  0x8f   :  { %v129_v16 = vpop.f32.mrf.mxu0  ;;  %v139_v17 = vpop.f32.mrf.mxu1 }
  0x90   :  { %v171_v18 = vmul.f32 %v597_v14, %v129_v16  ;;  %v175_v19 = vmul.f32 %v597_v14, %v139_v17 }
  0x92   :  { %v607_v20 = vadd.f32 %v602_v15, %v171_v18  ;;  %v610_v21 = vadd.f32 %v602_v15, %v175_v19 }
  0x94   :  { %v221_v22 = vmul.f32 %v607_v20, %v607_v20  ;;  %v225_v23 = vmul.f32 %v610_v21, %v610_v21  ;;  %v205_v19 = vmul.f32 0.5, %v607_v20 }
  0x96   :  { %v237_v24 = vmul.f32 %v221_v22, %v607_v20  ;;  %v241_v25 = vmul.f32 %v225_v23, %v610_v21  ;;  %v149_v26 = vpop.f32.mrf.mxu2  ;;  %v159_v27 = vpop.f32.mrf.mxu3 }
  0x97   :  { %v179_v28 = vmul.f32 %v597_v14, %v149_v26  ;;  %v183_v29 = vmul.f32 %v597_v14, %v159_v27  ;;  %v131_v30 = vpop.f32.mrf.mxu0  ;;  %v141_v31 = vpop.f32.mrf.mxu1  ;;  %v209_v27 = vmul.f32 0.5, %v610_v21 }
  0x98   :  { %v253_v32 = vmul.f32 0.044715, %v237_v24  ;;  %v257_v33 = vmul.f32 0.044715, %v241_v25  ;;  %v172_v34 = vmul.f32 %v597_v14, %v131_v30  ;;  %v176_v35 = vmul.f32 %v597_v14, %v141_v31 }
  0x99   :  { %v197_v36 = vadd.f32 %v602_v15, %v179_v28  ;;  %v624_v37 = vadd.f32 %v602_v15, %v183_v29 }
  0x9a   :  { %v269_v38 = vadd.f32 %v253_v32, %v607_v20  ;;  %v273_v39 = vadd.f32 %v257_v33, %v610_v21  ;;  %v629_v40 = vadd.f32 %v602_v15, %v172_v34  ;;  %v632_v41 = vadd.f32 %v602_v15, %v176_v35 }
  0x9b   :  { %v229_v42 = vmul.f32 %v197_v36, %v197_v36  ;;  %v233_v43 = vmul.f32 %v624_v37, %v624_v37  ;;  %v213_v28 = vmul.f32 0.5, %v197_v36  ;;  %v217_v33 = vmul.f32 0.5, %v624_v37 }
  0x9c   :  { %v285_v44 = vmul.f32 0.7978846, %v269_v38  ;;  %v222_v45 = vmul.f32 %v629_v40, %v629_v40  ;;  %v226_v48 = vmul.f32 %v632_v41, %v632_v41  ;;  %v289_v49 = vmul.f32 0.7978846, %v273_v39 }
  0x9d   :  { %v245_v46 = vmul.f32 %v229_v42, %v197_v36  ;;  %v249_v47 = vmul.f32 %v233_v43, %v624_v37 }
  0x9e   :  { %v238_v50 = vmul.f32 %v222_v45, %v629_v40  ;;  %v151_v51 = vpop.f32.mrf.mxu2  ;;  %v161_v52 = vpop.f32.mrf.mxu3  ;;  %501 = vtanh.f32 %v285_v44  ;;  %v242_v55 = vmul.f32 %v226_v48, %v632_v41 }
  0x9f   :  { %v261_v53 = vmul.f32 0.044715, %v245_v46  ;;  %v265_v54 = vmul.f32 0.044715, %v249_v47  ;;  %v134_v56 = vpop.f32.mrf.mxu0  ;;  %v144_v57 = vpop.f32.mrf.mxu1  ;;  %v180_v59 = vmul.f32 %v597_v14, %v151_v51  ;;  %v184_v60 = vmul.f32 %v597_v14, %v161_v52 }
  0xa0   :  { %v254_v58 = vmul.f32 0.044715, %v238_v50  ;;  %v173_v61 = vmul.f32 %v597_v14, %v134_v56  ;;  %v258_v0 = vmul.f32 0.044715, %v242_v55  ;;  %v177_v1 = vmul.f32 %v597_v14, %v144_v57 }
  0xa1   :  { %v277_v62 = vadd.f32 %v261_v53, %v197_v36  ;;  %v281_v63 = vadd.f32 %v265_v54, %v624_v37  ;;  %503 = vtanh.f32 %v289_v49  ;;  %v198_v3 = vadd.f32 %v602_v15, %v180_v59 }
  0xa2   :  { %v270_v2 = vadd.f32 %v254_v58, %v629_v40  ;;  %v651_v4 = vadd.f32 %v602_v15, %v184_v60  ;;  %v274_v7 = vadd.f32 %v258_v0, %v632_v41  ;;  %v655_v8 = vadd.f32 %v602_v15, %v173_v61 }
  0xa3   :  { %v293_v5 = vmul.f32 0.7978846, %v277_v62  ;;  %v297_v6 = vmul.f32 0.7978846, %v281_v63  ;;  %v230_v10 = vmul.f32 %v198_v3, %v198_v3  ;;  %v660_v16 = vadd.f32 %v602_v15, %v177_v1 }
  0xa4   :  { %v286_v9 = vmul.f32 0.7978846, %v270_v2  ;;  %v502_v11 = vpop.eup %501  ;;  %v290_v12 = vmul.f32 0.7978846, %v274_v7  ;;  %v234_v13 = vmul.f32 %v651_v4, %v651_v4  ;;  %v223_v23 = vmul.f32 %v655_v8, %v655_v8 }
  0xa5   :  { %505 = vtanh.f32 %v293_v5  ;;  %v246_v17 = vmul.f32 %v230_v10, %v198_v3  ;;  %v227_v20 = vmul.f32 %v660_v16, %v660_v16  ;;  %v317_v21 = vadd.f32 1.0, %v502_v11 }
  0xa6   :  { %507 = vtanh.f32 %v297_v6  ;;  %v154_v18 = vpop.f32.mrf.mxu2  ;;  %v250_v22 = vmul.f32 %v234_v13, %v651_v4  ;;  %v164_v24 = vpop.f32.mrf.mxu3  ;;  %v239_v31 = vmul.f32 %v223_v23, %v655_v8  ;;  %v206_v36 = vmul.f32 0.5, %v629_v40 }
  0xa7   :  { %509 = vtanh.f32 %v286_v9  ;;  %v136_v25 = vpop.f32.mrf.mxu0  ;;  %v504_v26 = vpop.eup %503  ;;  %v262_v29 = vmul.f32 0.044715, %v246_v17  ;;  %v181_v32 = vmul.f32 %v597_v14, %v154_v18  ;;  %v185_v35 = vmul.f32 %v597_v14, %v164_v24 }
  0xa8   :  { %511 = vtanh.f32 %v290_v12  ;;  %v266_v30 = vmul.f32 0.044715, %v250_v22  ;;  %v174_v38 = vmul.f32 %v597_v14, %v136_v25  ;;  %v243_v43 = vmul.f32 %v227_v20, %v660_v16  ;;  %v146_v37 = vpop.f32.mrf.mxu1 }
  0xa9   :  { %v278_v34 = vadd.f32 %v262_v29, %v198_v3  ;;  %v321_v45 = vadd.f32 1.0, %v504_v26  ;;  %v255_v47 = vmul.f32 0.044715, %v239_v31  ;;  %v678_v48 = vadd.f32 %v602_v15, %v181_v32 }
  0xaa   :  { %v282_v42 = vadd.f32 %v266_v30, %v651_v4  ;;  %v210_v50 = vmul.f32 0.5, %v632_v41  ;;  %v214_v51 = vmul.f32 0.5, %v198_v3  ;;  %v682_v53 = vadd.f32 %v602_v15, %v185_v35 }
  0xab   :  { %v506_v39 = vpop.eup %505  ;;  %v294_v46 = vmul.f32 0.7978846, %v278_v34  ;;  %v259_v55 = vmul.f32 0.044715, %v243_v43  ;;  %v685_v56 = vadd.f32 %v602_v15, %v174_v38  ;;  %v333_v57 = vmul.f32 %v317_v21, %v205_v19 }
  0xac   :  { %v508_v44 = vpop.eup %507  ;;  %v298_v52 = vmul.f32 0.7978846, %v282_v42  ;;  %v178_v59 = vmul.f32 %v597_v14, %v146_v37  ;;  %v337_v60 = vmul.f32 %v321_v45, %v209_v27  ;;  %v271_v41 = vadd.f32 %v255_v47, %v655_v8 }
  0xad   :  { %v510_v49 = vpop.eup %509  ;;  %513 = vtanh.f32 %v294_v46  ;;  %v231_v62 = vmul.f32 %v678_v48, %v678_v48  ;;  %v325_v0 = vadd.f32 1.0, %v506_v39  ;;  %v329_v1 = vadd.f32 1.0, %v508_v44 }
  0xae   :  { %v512_v40 = vpop.eup %511  ;;  %v318_v54 = vadd.f32 1.0, %v510_v49  ;;  %515 = vtanh.f32 %v298_v52  ;;  %v156_v63 = vpop.f32.mrf.mxu2  ;;  %v235_v3 = vmul.f32 %v682_v53, %v682_v53  ;;  %v275_v7 = vadd.f32 %v259_v55, %v660_v16 }
  0xaf   :  { %v322_v58 = vadd.f32 1.0, %v512_v40  ;;  %v166_v5 = vpop.f32.mrf.mxu3  ;;  %v247_v9 = vmul.f32 %v231_v62, %v678_v48  ;;  %v224_v10 = vmul.f32 %v685_v56, %v685_v56  ;;  %v699_v13 = vadd.f32 %v602_v15, %v178_v59 }
  0xb0   :  { %v334_v61 = vmul.f32 %v318_v54, %v206_v36  ;;  %v251_v12 = vmul.f32 %v235_v3, %v682_v53  ;;  %v182_v17 = vmul.f32 %v597_v14, %v156_v63  ;;  %v218_v19 = vmul.f32 0.5, %v651_v4 }
  0xb1   :  { %v338_v2 = vmul.f32 %v322_v58, %v210_v50  ;;  %v287_v22 = vmul.f32 0.7978846, %v271_v41  ;;  %v240_v23 = vmul.f32 %v224_v10, %v685_v56  ;;  %v186_v24 = vmul.f32 %v597_v14, %v166_v5 }
  0xb2   :  { %v446_v6 = vpack.c.bf16 %v334_v61, %v333_v57  ;;  %v341_v26 = vmul.f32 %v325_v0, %v213_v28  ;;  %v263_v29 = vmul.f32 0.044715, %v247_v9  ;;  %v228_v30 = vmul.f32 %v699_v13, %v699_v13 }
  0xb3   :  { %v456_v11 = vpack.c.bf16 %v338_v2, %v337_v60  ;;  %v514_v18 = vpop.eup %513  ;;  %v345_v31 = vmul.f32 %v329_v1, %v217_v33  ;;  %v267_v32 = vmul.f32 0.044715, %v251_v12  ;;  %v256_v4 = vmul.f32 0.044715, %v240_v23 }
  0xb4   :  { %447 = vst [vmem:[%s747_s3] sm:$0xff] %v446_v6   ;;  %v516_v25 = vpop.eup %515  ;;  %v326_v27 = vadd.f32 1.0, %v514_v18  ;;  %v291_v35 = vmul.f32 0.7978846, %v275_v7  ;;  %v244_v38 = vmul.f32 %v228_v30, %v699_v13  ;;  %v200_v14 = vadd.f32 %v602_v15, %v182_v17 }
  0xb5   :  { %484 = vst [vmem:[%s747_s3 + $0x10] sm:$0xff] %v456_v11   ;;  %v330_v20 = vadd.f32 1.0, %v516_v25  ;;  %517 = vtanh.f32 %v287_v22  ;;  %v272_v39 = vadd.f32 %v256_v4, %v685_v56  ;;  %v204_v21 = vadd.f32 %v602_v15, %v186_v24 }
  0xb6   :  { %v342_v34 = vmul.f32 %v326_v27, %v214_v51  ;;  %v279_v42 = vadd.f32 %v263_v29, %v678_v48  ;;  %v260_v43 = vmul.f32 0.044715, %v244_v38  ;;  %v283_v44 = vadd.f32 %v267_v32, %v682_v53 }
  0xb7   :  { %v346_v28 = vmul.f32 %v330_v20, %v218_v19  ;;  %v288_v45 = vmul.f32 0.7978846, %v272_v39  ;;  %519 = vtanh.f32 %v291_v35  ;;  %v232_v47 = vmul.f32 %v200_v14, %v200_v14 }
  0xb8   :  { %v466_v36 = vpack.c.bf16 %v342_v34, %v341_v26  ;;  %v276_v46 = vadd.f32 %v260_v43, %v699_v13  ;;  %v236_v15 = vmul.f32 %v204_v21, %v204_v21  ;;  %v295_v37 = vmul.f32 0.7978846, %v279_v42 }
  0xb9   :  { %v476_v33 = vpack.c.bf16 %v346_v28, %v345_v31  ;;  %521 = vtanh.f32 %v288_v45  ;;  %v248_v50 = vmul.f32 %v232_v47, %v200_v14  ;;  %v299_v52 = vmul.f32 0.7978846, %v283_v44 }
  0xba   :  { %486 = vst [vmem:[%s747_s3 + $0x20] sm:$0xff] %v466_v36   ;;  %v292_v49 = vmul.f32 0.7978846, %v276_v46  ;;  %v252_v40 = vmul.f32 %v236_v15, %v204_v21  ;;  %v207_v41 = vmul.f32 0.5, %v655_v8  ;;  %v208_v62 = vmul.f32 0.5, %v685_v56 }
  0xbb   :  { %488 = vst [vmem:[%s747_s3 + $0x30] sm:$0xff] %v476_v33   ;;  %v518_v51 = vpop.eup %517  ;;  %v264_v54 = vmul.f32 0.044715, %v248_v50  ;;  %v211_v7 = vmul.f32 0.5, %v660_v16  ;;  %v212_v9 = vmul.f32 0.5, %v699_v13  ;;  %v215_v16 = vmul.f32 0.5, %v678_v48 }
  0xbc   :  { %523 = vtanh.f32 %v292_v49  ;;  %v268_v55 = vmul.f32 0.044715, %v252_v40  ;;  %v319_v58 = vadd.f32 1.0, %v518_v51  ;;  %v216_v13 = vmul.f32 0.5, %v200_v14 }
  0xbd   :  { %v520_v57 = vpop.eup %519  ;;  %525 = vtanh.f32 %v295_v37  ;;  %v280_v59 = vadd.f32 %v264_v54, %v200_v14  ;;  %v219_v26 = vmul.f32 0.5, %v682_v53  ;;  %v220_v27 = vmul.f32 0.5, %v204_v21 }
  0xbe   :  { %527 = vtanh.f32 %v299_v52  ;;  %v284_v61 = vadd.f32 %v268_v55, %v204_v21  ;;  %v323_v1 = vadd.f32 1.0, %v520_v57  ;;  %v335_v5 = vmul.f32 %v319_v58, %v207_v41 }
  0xbf   :  { %v522_v60 = vpop.eup %521  ;;  %v296_v0 = vmul.f32 0.7978846, %v280_v59 }
  0xc0   :  { %v320_v63 = vadd.f32 1.0, %v522_v60  ;;  %v300_v2 = vmul.f32 0.7978846, %v284_v61  ;;  %v339_v8 = vmul.f32 %v323_v1, %v211_v7 }
  0xc1   :  { %529 = vtanh.f32 %v296_v0 }
  0xc2   :  { %v524_v3 = vpop.eup %523  ;;  %v336_v6 = vmul.f32 %v320_v63, %v208_v62  ;;  %531 = vtanh.f32 %v300_v2 }
  0xc3   :  { %v324_v10 = vadd.f32 1.0, %v524_v3  ;;  %v526_v11 = vpop.eup %525 }
  0xc4   :  { %v451_v12 = vpack.c.bf16 %v336_v6, %v335_v5  ;;  %v528_v17 = vpop.eup %527  ;;  %v327_v56 = vadd.f32 1.0, %v526_v11 }
  0xc5   :  { %v340_v18 = vmul.f32 %v324_v10, %v212_v9  ;;  %v331_v23 = vadd.f32 1.0, %v528_v17 }
  0xc6   :  { %483 = vst [vmem:[%s747_s3 + $0x8] sm:$0xff] %v451_v12   ;;  %v343_v30 = vmul.f32 %v327_v56, %v215_v16 }
  0xc7   :  { %v461_v19 = vpack.c.bf16 %v340_v18, %v339_v8  ;;  %v530_v22 = vpop.eup %529  ;;  %v347_v20 = vmul.f32 %v331_v23, %v219_v26 }
  0xc8   :  { %v532_v24 = vpop.eup %531  ;;  %v328_v25 = vadd.f32 1.0, %v530_v22 }
  0xc9   :  { %485 = vst [vmem:[%s747_s3 + $0x18] sm:$0xff] %v461_v19   ;;  %v332_v29 = vadd.f32 1.0, %v532_v24 }
  0xca   :  { %v344_v31 = vmul.f32 %v328_v25, %v216_v13 }
  0xcb   :  { %v348_v32 = vmul.f32 %v332_v29, %v220_v27 }
  0xcc   :  { %v471_v4 = vpack.c.bf16 %v344_v31, %v343_v30 }
  0xcd   :  { %v481_v34 = vpack.c.bf16 %v348_v32, %v347_v20 }
  0xce   :  { %487 = vst [vmem:[%s747_s3 + $0x28] sm:$0xff] %v471_v4  }
  0xcf   :  { %489 = vst [vmem:[%s747_s3 + $0x38] sm:$0xff] %v481_v34  }

// kernel: stemconv_forward.4
= control target key start
LH: loop header
LB: loop body
LE: loop exit
PB: predicated region body
PF: predicated region fallthrough
CT: control target
= control target key end

     0   :  { %vm113_vm0 = vcmask 1041408   ;;  %vm88_vm1 = vcmask 293888   ;;  %vm224_vm2 = vcmask 1040384   ;;  %s357_s1 = inlined_call_operand.vmem [shape: bf16[36,128], index: 1, kind: input, shape index: {}]   ;;  %s358_s0 = inlined_call_operand.vmem [shape: bf16[128,36], index: 0, kind: input, shape index: {}]   ;;  %s359_s2 = inlined_call_operand.vmem [shape: f32[1,2,128], index: 2, kind: output, shape index: {}]  }
   0x1   :  { %v32_v0 = vld [vmem:[%s357_s1 + $0x10] sm:$0x3]  ;;  %v288_v4 = vld [vmem:[%s357_s1 + $0x8] sm:$0xff]  ;;  %v287_v5 = vld [vmem:[%s357_s1] sm:$0xff] }
   0x2   :  { %v82_v1 = vunpack.c.l.b16 %v32_v0  ;;  %v279_v6 = vld [vmem:[%s358_s0] sm:$0xff]  ;;  %v281_v7 = vld [vmem:[%s358_s0 + $0x10] sm:$0xff]  ;;  %v280_v10 = vld [vmem:[%s358_s0 + $0x8] sm:$0xff] }
   0x3   :  { %v283_v8 = vld [vmem:[%s358_s0 + $0x20] sm:$0xff]  ;;  %v285_v9 = vld [vmem:[%s358_s0 + $0x30] sm:$0xff]  ;;  %v282_v11 = vld [vmem:[%s358_s0 + $0x18] sm:$0xff] }
   0x4   :  { %v85_v2 = vpack.c.b16 %v82_v1, %v82_v1  ;;  %v284_v12 = vld [vmem:[%s358_s0 + $0x28] sm:$0xff]  ;;  %v286_v13 = vld [vmem:[%s358_s0 + $0x38] sm:$0xff] }
   0x6   :  { %v115_v3 = vsel %vm113_vm0, %v85_v2, 0 }
   0x7   :  { %122 = vmatpush.bf16.msra.mxu0 %v115_v3  ;;  %289 = vmatpush.bf16.msra.mxu1 %v115_v3 }
   0x8   :  { %290 = vmatpush.bf16.msra.mxu2 %v115_v3  ;;  %291 = vmatpush.bf16.msra.mxu3 %v115_v3 }
   0xb   :  { %123 = vmatpush.bf16.msra.mxu0 %v288_v4  ;;  %292 = vmatpush.bf16.msra.mxu1 %v288_v4 }
   0xc   :  { %293 = vmatpush.bf16.msra.mxu2 %v288_v4  ;;  %294 = vmatpush.bf16.msra.mxu3 %v288_v4 }
   0xf   :  { %124 = vmatpush.bf16.msra.mxu0 %v287_v5  ;;  %295 = vmatpush.bf16.msra.mxu1 %v287_v5 }
  0x10   :  { %296 = vmatpush.bf16.msra.mxu2 %v287_v5  ;;  %297 = vmatpush.bf16.msra.mxu3 %v287_v5 }
  0x12   :  { %271 = vmatmul.msk.bf16.vlgmr.msra.gmra.mxu0 %vm88_vm1, %v279_v6  ;;  %273 = vmatmul.msk.bf16.vlgmr.msra.gmra.mxu1 %vm88_vm1, %v281_v7 }
  0x13   :  { %275 = vmatmul.msk.bf16.vlgmr.msra.gmra.mxu2 %vm88_vm1, %v283_v8  ;;  %277 = vmatmul.msk.bf16.vlgmr.msra.gmra.mxu3 %vm88_vm1, %v285_v9 }
  0x22   :  { %272 = vmatmul.msk.bf16.gmra.mxu0 %vm88_vm1, %v280_v10  ;;  %274 = vmatmul.msk.bf16.gmra.mxu1 %vm88_vm1, %v282_v11 }
  0x23   :  { %276 = vmatmul.msk.bf16.gmra.mxu2 %vm88_vm1, %v284_v12  ;;  %278 = vmatmul.msk.bf16.gmra.mxu3 %vm88_vm1, %v286_v13 }
  0x8f   :  { %v126_v14 = vpop.f32.mrf.mxu0  ;;  %v136_v15 = vpop.f32.mrf.mxu1 }
  0x90   :  { %v187_v24 = vmul.f32 %v126_v14, %v126_v14  ;;  %v191_v34 = vmul.f32 %v136_v15, %v136_v15 }
  0x96   :  { %v146_v17 = vpop.f32.mrf.mxu2  ;;  %v156_v20 = vpop.f32.mrf.mxu3 }
  0x97   :  { %v128_v16 = vpop.f32.mrf.mxu0  ;;  %v138_v18 = vpop.f32.mrf.mxu1  ;;  %v195_v48 = vmul.f32 %v146_v17, %v146_v17  ;;  %v199_v62 = vmul.f32 %v156_v20, %v156_v20 }
  0x98   :  { %v188_v22 = vmul.f32 %v128_v16, %v128_v16  ;;  %v166_v25 = vadd.f32 %v128_v16, %v126_v14  ;;  %v192_v38 = vmul.f32 %v138_v18, %v138_v18 }
  0x9a   :  { %v203_v27 = vadd.f32 %v188_v22, %v187_v24 }
  0x9e   :  { %v148_v21 = vpop.f32.mrf.mxu2  ;;  %v158_v33 = vpop.f32.mrf.mxu3 }
  0x9f   :  { %v131_v19 = vpop.f32.mrf.mxu0  ;;  %v141_v23 = vpop.f32.mrf.mxu1  ;;  %v196_v52 = vmul.f32 %v148_v21, %v148_v21  ;;  %v200_v1 = vmul.f32 %v158_v33, %v158_v33 }
  0xa0   :  { %v189_v26 = vmul.f32 %v131_v19, %v131_v19  ;;  %v167_v28 = vadd.f32 %v166_v25, %v131_v19  ;;  %v193_v42 = vmul.f32 %v141_v23, %v141_v23 }
  0xa2   :  { %v204_v30 = vadd.f32 %v203_v27, %v189_v26 }
  0xa6   :  { %v151_v37 = vpop.f32.mrf.mxu2  ;;  %v161_v51 = vpop.f32.mrf.mxu3 }
  0xa7   :  { %v133_v29 = vpop.f32.mrf.mxu0  ;;  %v143_v41 = vpop.f32.mrf.mxu1  ;;  %v197_v57 = vmul.f32 %v151_v37, %v151_v37  ;;  %v201_v6 = vmul.f32 %v161_v51, %v161_v51 }
  0xa8   :  { %v168_v31 = vadd.f32 %v167_v28, %v133_v29  ;;  %v190_v32 = vmul.f32 %v133_v29, %v133_v29  ;;  %v194_v46 = vmul.f32 %v143_v41, %v143_v41 }
  0xaa   :  { %v169_v35 = vadd.f32 %v168_v31, %v136_v15  ;;  %v205_v36 = vadd.f32 %v204_v30, %v190_v32 }
  0xac   :  { %v206_v39 = vadd.f32 %v205_v36, %v191_v34  ;;  %v170_v40 = vadd.f32 %v169_v35, %v138_v18 }
  0xae   :  { %v171_v43 = vadd.f32 %v170_v40, %v141_v23  ;;  %v207_v44 = vadd.f32 %v206_v39, %v192_v38  ;;  %v153_v55 = vpop.f32.mrf.mxu2  ;;  %v163_v4 = vpop.f32.mrf.mxu3 }
  0xaf   :  { %v198_v61 = vmul.f32 %v153_v55, %v153_v55  ;;  %v202_v10 = vmul.f32 %v163_v4, %v163_v4 }
  0xb0   :  { %v172_v45 = vadd.f32 %v171_v43, %v143_v41  ;;  %v208_v47 = vadd.f32 %v207_v44, %v193_v42 }
  0xb2   :  { %v173_v49 = vadd.f32 %v172_v45, %v146_v17  ;;  %v209_v50 = vadd.f32 %v208_v47, %v194_v46 }
  0xb4   :  { %v210_v53 = vadd.f32 %v209_v50, %v195_v48  ;;  %v174_v54 = vadd.f32 %v173_v49, %v148_v21 }
  0xb6   :  { %v175_v56 = vadd.f32 %v174_v54, %v151_v37  ;;  %v211_v58 = vadd.f32 %v210_v53, %v196_v52 }
  0xb8   :  { %v212_v59 = vadd.f32 %v211_v58, %v197_v57  ;;  %v176_v60 = vadd.f32 %v175_v56, %v153_v55 }
  0xba   :  { %v177_v63 = vadd.f32 %v176_v60, %v156_v20  ;;  %v213_v0 = vadd.f32 %v212_v59, %v198_v61 }
  0xbc   :  { %v214_v2 = vadd.f32 %v213_v0, %v199_v62  ;;  %v178_v3 = vadd.f32 %v177_v63, %v158_v33 }
  0xbe   :  { %v179_v5 = vadd.f32 %v178_v3, %v161_v51  ;;  %v215_v7 = vadd.f32 %v214_v2, %v200_v1 }
  0xc0   :  { %v216_v8 = vadd.f32 %v215_v7, %v201_v6  ;;  %v180_v9 = vadd.f32 %v179_v5, %v163_v4 }
  0xc2   :  { %v181_v11 = vrot.slane %v180_v9, 4  ;;  %v217_v12 = vadd.f32 %v216_v8, %v202_v10 }
  0xc4   :  { %v182_v13 = vadd.f32 %v181_v11, %v180_v9  ;;  %v218_v14 = vrot.slane %v217_v12, 4 }
  0xc6   :  { %v183_v15 = vrot.slane %v182_v13, 2  ;;  %v219_v16 = vadd.f32 %v218_v14, %v217_v12 }
  0xc8   :  { %v184_v17 = vadd.f32 %v183_v15, %v182_v13  ;;  %v220_v18 = vrot.slane %v219_v16, 2 }
  0xca   :  { %v185_v19 = vrot.slane %v184_v17, 1  ;;  %v221_v20 = vadd.f32 %v220_v18, %v219_v16 }
  0xcc   :  { %v222_v21 = vrot.slane %v221_v20, 1  ;;  %v186_v22 = vadd.f32 %v185_v19, %v184_v17 }
  0xce   :  { %v223_v23 = vadd.f32 %v222_v21, %v221_v20 }
  0xd0   :  { %v225_v24 = vsel %vm224_vm2, %v186_v22, %v223_v23 }
  0xd1   :  { %226 = vst [vmem:[%s359_s2] sm:$0x3] %v225_v24 }

// kernel: stemconv_forward.6
= control target key start
LH: loop header
LB: loop body
LE: loop exit
PB: predicated region body
PF: predicated region fallthrough
CT: control target
= control target key end

     0   :  { %vm69_vm0 = vcmask 1043456   ;;  %vm62_vm1 = vcmask 588800   ;;  %vm114_vm2 = vcmask 1040384   ;;  %s197_s1 = inlined_call_operand.vmem [shape: bf16[72,128], index: 1, kind: input, shape index: {}]   ;;  %s198_s0 = inlined_call_operand.vmem [shape: bf16[32,72], index: 0, kind: input, shape index: {}]   ;;  %s199_s2 = inlined_call_operand.vmem [shape: f32[1,2,128], index: 2, kind: output, shape index: {}]  }
   0x1   :  { %v24_v0 = vld [vmem:[%s197_s1 + $0x20] sm:$0xf]  ;;  %v152_v4 = vld [vmem:[%s197_s1 + $0x18] sm:$0xff]  ;;  %v151_v5 = vld [vmem:[%s197_s1 + $0x10] sm:$0xff] }
   0x2   :  { %v52_v1 = vunpack.c.l.b16 %v24_v0  ;;  %v150_v6 = vld [vmem:[%s197_s1 + $0x8] sm:$0xff]  ;;  %v149_v7 = vld [vmem:[%s197_s1] sm:$0xff] }
   0x3   :  { %v147_v8 = vld [vmem:[%s198_s0] sm:$0xff]  ;;  %v148_v9 = vld [vmem:[%s198_s0 + $0x8] sm:$0xff] }
   0x4   :  { %v57_v2 = vpack.c.b16 %v52_v1, %v52_v1 }
   0x6   :  { %v71_v3 = vsel %vm69_vm0, %v57_v2, 0 }
   0x7   :  { %76 = vmatpush.bf16.msra.mxu0 %v71_v3  ;;  %153 = vmatpush.bf16.msra.mxu1 %v71_v3 }
   0xb   :  { %77 = vmatpush.bf16.msra.mxu0 %v152_v4  ;;  %154 = vmatpush.bf16.msra.mxu1 %v152_v4 }
   0xf   :  { %78 = vmatpush.bf16.msra.mxu0 %v151_v5  ;;  %155 = vmatpush.bf16.msra.mxu1 %v151_v5 }
  0x13   :  { %79 = vmatpush.bf16.msra.mxu0 %v150_v6  ;;  %156 = vmatpush.bf16.msra.mxu1 %v150_v6 }
  0x17   :  { %80 = vmatpush.bf16.msra.mxu0 %v149_v7  ;;  %157 = vmatpush.bf16.msra.mxu1 %v149_v7 }
  0x1a   :  { %145 = vmatmul.msk.bf16.vlgmr.msra.gmra.mxu0 %vm62_vm1, %v147_v8  ;;  %146 = vmatmul.msk.bf16.vlgmr.msra.gmra.mxu1 %vm62_vm1, %v148_v9 }
  0x97   :  { %v82_v10 = vpop.f32.mrf.mxu0  ;;  %v87_v11 = vpop.f32.mrf.mxu1 }
  0x98   :  { %v101_v13 = vmul.f32 %v82_v10, %v82_v10  ;;  %v103_v17 = vmul.f32 %v87_v11, %v87_v11 }
  0x9f   :  { %v84_v12 = vpop.f32.mrf.mxu0  ;;  %v89_v16 = vpop.f32.mrf.mxu1 }
  0xa0   :  { %v92_v14 = vadd.f32 %v84_v12, %v82_v10  ;;  %v102_v15 = vmul.f32 %v84_v12, %v84_v12  ;;  %v104_v21 = vmul.f32 %v89_v16, %v89_v16 }
  0xa2   :  { %v105_v18 = vadd.f32 %v102_v15, %v101_v13  ;;  %v93_v19 = vadd.f32 %v92_v14, %v87_v11 }
  0xa4   :  { %v94_v20 = vadd.f32 %v93_v19, %v89_v16  ;;  %v106_v22 = vadd.f32 %v105_v18, %v103_v17 }
  0xa6   :  { %v95_v23 = vrot.slane %v94_v20, 4  ;;  %v107_v24 = vadd.f32 %v106_v22, %v104_v21 }
  0xa8   :  { %v96_v25 = vadd.f32 %v95_v23, %v94_v20  ;;  %v108_v26 = vrot.slane %v107_v24, 4 }
  0xaa   :  { %v97_v27 = vrot.slane %v96_v25, 2  ;;  %v109_v28 = vadd.f32 %v108_v26, %v107_v24 }
  0xac   :  { %v98_v29 = vadd.f32 %v97_v27, %v96_v25  ;;  %v110_v30 = vrot.slane %v109_v28, 2 }
  0xae   :  { %v99_v31 = vrot.slane %v98_v29, 1  ;;  %v111_v32 = vadd.f32 %v110_v30, %v109_v28 }
  0xb0   :  { %v112_v33 = vrot.slane %v111_v32, 1  ;;  %v100_v34 = vadd.f32 %v99_v31, %v98_v29 }
  0xb2   :  { %v113_v35 = vadd.f32 %v112_v33, %v111_v32 }
  0xb4   :  { %v115_v36 = vsel %vm114_vm2, %v100_v34, %v113_v35 }
  0xb5   :  { %116 = vst [vmem:[%s199_s2] sm:$0x3] %v115_v36 }

// kernel: stemconv_forward.7
= control target key start
LH: loop header
LB: loop body
LE: loop exit
PB: predicated region body
PF: predicated region fallthrough
CT: control target
= control target key end

     0   :  { %vm73_vm0 = vcmask 1043456   ;;  %s251_s0 = inlined_call_operand.vmem [shape: bf16[32,72], index: 0, kind: input, shape index: {}]   ;;  %s252_s1 = inlined_call_operand.vmem [shape: bf16[72,128], index: 1, kind: input, shape index: {}]   ;;  %s253_s2 = inlined_call_operand.vmem [shape: f32[2,128], index: 2, kind: input, shape index: {}]   ;;  %s254_s3 = inlined_call_operand.hbm [shape: f32[32,128], index: 3, kind: output, shape index: {}]  }
   0x1   :  { %v28_v0 = vld [vmem:[%s252_s1 + $0x20] sm:$0xf] }
   0x2   :  { %v56_v1 = vunpack.c.l.b16 %v28_v0 }
   0x4   :  { %v61_v2 = vpack.c.b16 %v56_v1, %v56_v1 }
   0x5   :  { %8 = vsyncpa [#allocation3], 0  ;;  %v161_v4 = vld [vmem:[%s252_s1 + $0x18] sm:$0xff]  ;;  %v160_v5 = vld [vmem:[%s252_s1 + $0x10] sm:$0xff]  ;;  %vm66_vm1 = vcmask 588800   ;;  %s118_s5 = sshll.u32 %s254_s3, 4  ;;  %s119_s5 = int_to_ptr.hbm [resolvable:$true] %s118_s5 }
   0x6   :  { %v75_v3 = vsel %vm73_vm0, %v61_v2, 0  ;;  %v159_v6 = vld [vmem:[%s252_s1 + $0x8] sm:$0xff]  ;;  %v158_v7 = vld [vmem:[%s252_s1] sm:$0xff]  ;;  %s200_s6 = smov 8  }
   0x7   :  { %80 = vmatpush.bf16.msra.mxu0 %v75_v3  ;;  %162 = vmatpush.bf16.msra.mxu1 %v75_v3  ;;  %v156_v8 = vld [vmem:[%s251_s0] sm:$0xff]  ;;  %v157_v9 = vld [vmem:[%s251_s0 + $0x8] sm:$0xff]  ;;  %s198_s0 = smov [#allocation2]  }
   0x8   :  { %v170_v10 = vld [vmem:[%s253_s2] ss:$0 sm:$0xff]  ;;  %v171_v11 = vld [vmem:[%s253_s2 + $0x1] ss:$0 sm:$0xff]  ;;  %s116_s1 = sshll.u32 %s198_s0, 4  ;;  %s199_s2 = smov 128   ;;  %s117_s1 = int_to_ptr.vmem [resolvable:$true] %s116_s1 }
   0xb   :  { %81 = vmatpush.bf16.msra.mxu0 %v161_v4  ;;  %163 = vmatpush.bf16.msra.mxu1 %v161_v4 }
   0xf   :  { %82 = vmatpush.bf16.msra.mxu0 %v160_v5  ;;  %164 = vmatpush.bf16.msra.mxu1 %v160_v5 }
  0x13   :  { %83 = vmatpush.bf16.msra.mxu0 %v159_v6  ;;  %165 = vmatpush.bf16.msra.mxu1 %v159_v6 }
  0x17   :  { %84 = vmatpush.bf16.msra.mxu0 %v158_v7  ;;  %166 = vmatpush.bf16.msra.mxu1 %v158_v7 }
  0x1a   :  { %154 = vmatmul.msk.bf16.vlgmr.msra.gmra.mxu0 %vm66_vm1, %v156_v8  ;;  %155 = vmatmul.msk.bf16.vlgmr.msra.gmra.mxu1 %vm66_vm1, %v157_v9 }
  0x97   :  { %v86_v12 = vpop.f32.mrf.mxu0  ;;  %v91_v13 = vpop.f32.mrf.mxu1 }
  0x98   :  { %v98_v14 = vmul.f32 %v170_v10, %v86_v12  ;;  %v100_v15 = vmul.f32 %v170_v10, %v91_v13 }
  0x9a   :  { %v104_v16 = vadd.f32 %v171_v11, %v98_v14  ;;  %v106_v17 = vadd.f32 %v171_v11, %v100_v15 }
  0x9c   :  { %108 = vst [vmem:[#allocation2] sm:$0xff] %v104_v16 }
  0x9d   :  { %110 = vst [vmem:[#allocation2 + $0x10] sm:$0xff] %v106_v17 }
  0x9f   :  { %v88_v18 = vpop.f32.mrf.mxu0  ;;  %v93_v19 = vpop.f32.mrf.mxu1 }
  0xa0   :  { %v99_v20 = vmul.f32 %v170_v10, %v88_v18  ;;  %v101_v21 = vmul.f32 %v170_v10, %v93_v19 }
  0xa2   :  { %v105_v22 = vadd.f32 %v171_v11, %v99_v20  ;;  %v107_v23 = vadd.f32 %v171_v11, %v101_v21 }
  0xa4   :  { %109 = vst [vmem:[#allocation2 + $0x8] sm:$0xff] %v105_v22 }
  0xa5   :  { %111 = vst [vmem:[#allocation2 + $0x18] sm:$0xff] %v107_v23 }
  0xa6   :  { %124 = dma.vmem_to_hbm [thread:$0]  %s117_s1, 512, %s119_s5, [#allocation3], %s199_s2, %s199_s2, %s200_s6  }
  0xa7   :  { %196 = dma.done.wait [#allocation3], 512  }
  0xa8   :  { %197 = vsyncadd [#allocation3], 4294966784 }
  0xa9   :  { %129 = vsyncpa [#allocation3], 1 }

</bundles_post_ra>
